<compile_context>
chip_gen: v6e
topology: v6e:2x2x1
jax: 0.10.0
libtpu: 0.0.40
codegen_flags: <defaults>
</compile_context>

<pallas_src>
import jax
import jax.numpy as jnp
from jax.experimental import pallas as pl
from jax.experimental.pallas import tpu as pltpu


def _mlp_kernel(x_ref, *refs):
    """refs = (w0, b0, w1, b1, ..., wL, bL, o_ref).

    h = relu(h @ w_i + b_i) for all but the last layer; final layer gets tanh.
    Weights are stored (in_dim, out_dim), i.e. already transposed from the
    PyTorch (out, in) layout, so the matmul is a plain h @ w on the MXU.
    """
    o_ref = refs[-1]
    wb_refs = refs[:-1]
    n_layers = len(wb_refs) // 2

    h = x_ref[...].astype(jnp.float32)
    for li in range(n_layers):
        w = wb_refs[2 * li][...]
        b = wb_refs[2 * li + 1][...]          # (1, out_d) -> broadcasts over rows
        h = jnp.dot(h, w, preferred_element_type=jnp.float32) + b
        if li < n_layers - 1:
            h = jnp.maximum(h, 0.0)            # ReLU
        else:
            h = jnp.tanh(h)                    # torch.tanh_
    o_ref[...] = h.astype(o_ref.dtype)


def _pick_tile_rows(n, feat_dims, itemsize, budget_bytes, cap=2048):
    """Largest multiple-of-8 row tile whose activation working set fits the budget."""
    in_d, out_d = feat_dims[0], feat_dims[-1]
    widest = max(feat_dims)
    # double-buffered x tile + double-buffered out tile + widest intermediate
    per_row = itemsize * (2 * in_d + 2 * out_d + 2 * widest)
    tile = max(8, budget_bytes // max(per_row, 1))
    tile = min(tile, cap)
    n_pad8 = ((n + 7) // 8) * 8
    tile = min(tile, n_pad8)
    return max(8, (tile // 8) * 8)


def mlp_forward(x, weights, biases):
    """x: (N, input_dims). weights[i]: (in_d, out_d) (pre-transposed). biases[i]: (out_d,)."""
    N, in_dim = x.shape
    dtype = x.dtype
    itemsize = jnp.dtype(dtype).itemsize
    feat_dims = [in_dim] + [int(w.shape[1]) for w in weights]
    out_dim = feat_dims[-1]

    # Resident (double-buffered) parameter bytes; budget the activation tiles
    # around them so the whole working set stays well under scoped VMEM on all
    # of v5e / v6e / v7x.
    param_bytes = sum(int(w.size) for w in weights) * itemsize
    param_bytes += sum(int(b.size) for b in biases) * itemsize
    budget = max((32 << 20) - 2 * param_bytes, 4 << 20)
    tile_rows = _pick_tile_rows(N, feat_dims, itemsize, budget)

    # Pad batch rows so the grid covers N exactly; padded rows are dropped.
    n_pad = ((N + tile_rows - 1) // tile_rows) * tile_rows
    x_in = x if n_pad == N else jnp.zeros((n_pad, in_dim), dtype).at[:N].set(x)

    weights = [w.astype(dtype) for w in weights]
    biases2 = [b.reshape(1, -1).astype(dtype) for b in biases]

    in_specs = [pl.BlockSpec((tile_rows, in_dim), lambda i: (i, 0))]
    flat_params = []
    for w, b in zip(weights, biases2):
        in_specs.append(pl.BlockSpec(w.shape, lambda i: (0, 0)))   # full weight, resident
        in_specs.append(pl.BlockSpec(b.shape, lambda i: (0, 0)))   # full bias, resident
        flat_params += [w, b]

    out = pl.pallas_call(
        _mlp_kernel,
        out_shape=jax.ShapeDtypeStruct((n_pad, out_dim), dtype),
        grid_spec=pltpu.PrefetchScalarGridSpec(
            num_scalar_prefetch=0,
            grid=(n_pad // tile_rows,),
            in_specs=in_specs,
            out_specs=pl.BlockSpec((tile_rows, out_dim), lambda i: (i, 0)),
        ),
        compiler_params=pltpu.CompilerParams(
            dimension_semantics=("parallel",),
            vmem_limit_bytes=48 << 20,
        ),
    )(x_in, *flat_params)
    return out[:N]


def mlp_reference(x, weights, biases):
    h = x
    last = len(weights) - 1
    for i, (w, b) in enumerate(zip(weights, biases)):
        h = h @ w + b.reshape(1, -1)
        h = jnp.maximum(h, 0.0) if i < last else jnp.tanh(h)
    return h


if __name__ == "__main__":
    key = jax.random.PRNGKey(0)

    # Small shapes consistent with the module: MLP(input_dims=32, hid_dims=[64, 32], out_dims=16)
    batch, input_dims, hid_dims, out_dims = 10, 32, [64, 32], 16
    dims = [input_dims] + hid_dims + [out_dims]

    keys = jax.random.split(key, 2 * len(dims))
    x = jax.random.normal(keys[0], (batch, input_dims), dtype=jnp.float32)

    # Deterministic parameter init (weights stored as (in, out), i.e. W^T of the
    # PyTorch layout; biases zero as in the module's reset_parameters()).
    weights, biases = [], []
    for li in range(len(dims) - 1):
        fan_in, fan_out = dims[li], dims[li + 1]
        w = jax.random.normal(keys[li + 1], (fan_in, fan_out), dtype=jnp.float32)
        w = w * (1.0 / jnp.sqrt(jnp.float32(fan_in)))
        weights.append(w)
        biases.append(jnp.zeros((fan_out,), dtype=jnp.float32))

    out = mlp_forward(x, weights, biases)
    jax.block_until_ready(out)

    ref = mlp_reference(x, weights, biases)
    assert out.shape == (batch, out_dims), f"bad output shape {out.shape}"
    assert jnp.allclose(out, ref, atol=1e-5, rtol=1e-5), "MLP forward mismatch"

    # Second check with nonzero biases to exercise the bias-add path.
    biases_nz = [jnp.linspace(-0.5, 0.5, d, dtype=jnp.float32) for d in dims[1:]]
    out_nz = mlp_forward(x, weights, biases_nz)
    jax.block_until_ready(out_nz)
    assert jnp.allclose(out_nz, mlp_reference(x, weights, biases_nz),
                        atol=1e-5, rtol=1e-5), "nonzero-bias mismatch"

    print("KERNEL_OK")
</pallas_src>

<mosaic_0001>
module attributes {stable_mosaic.version = 11 : i64} {
  func.func @_mlp_kernel(%arg0: i32, %arg1: memref<16x32xf32, #tpu.memory_space<vmem>>, %arg2: memref<32x64xf32, #tpu.memory_space<vmem>>, %arg3: memref<1x64xf32, #tpu.memory_space<vmem>>, %arg4: memref<64x32xf32, #tpu.memory_space<vmem>>, %arg5: memref<1x32xf32, #tpu.memory_space<vmem>>, %arg6: memref<32x16xf32, #tpu.memory_space<vmem>>, %arg7: memref<1x16xf32, #tpu.memory_space<vmem>>, %arg8: memref<16x16xf32, #tpu.memory_space<vmem>>) attributes {dimension_semantics = [#tpu.dimension_semantics<parallel>], iteration_bounds = array<i64: 1>, scalar_prefetch = 0 : i64, scratch_operands = 0 : i64, tpu.core_type = #tpu.core_type<tc>, window_params = [{transform_indices = @transform_0, window_bounds = array<i64: 16, 32>}, {pipeline_mode = #tpu.pipeline_mode<synchronous>, transform_indices = @transform_1, window_bounds = array<i64: 32, 64>}, {pipeline_mode = #tpu.pipeline_mode<synchronous>, transform_indices = @transform_2, window_bounds = array<i64: 1, 64>}, {pipeline_mode = #tpu.pipeline_mode<synchronous>, transform_indices = @transform_3, window_bounds = array<i64: 64, 32>}, {pipeline_mode = #tpu.pipeline_mode<synchronous>, transform_indices = @transform_4, window_bounds = array<i64: 1, 32>}, {pipeline_mode = #tpu.pipeline_mode<synchronous>, transform_indices = @transform_5, window_bounds = array<i64: 32, 16>}, {pipeline_mode = #tpu.pipeline_mode<synchronous>, transform_indices = @transform_6, window_bounds = array<i64: 1, 16>}, {transform_indices = @transform_7, window_bounds = array<i64: 16, 16>}]} {
    %c0 = arith.constant 0 : index
    %c0_0 = arith.constant 0 : index
    %0 = vector.load %arg1[%c0, %c0_0] : memref<16x32xf32, #tpu.memory_space<vmem>>, vector<16x32xf32>
    %c0_1 = arith.constant 0 : index
    %c0_2 = arith.constant 0 : index
    %1 = vector.load %arg2[%c0_1, %c0_2] : memref<32x64xf32, #tpu.memory_space<vmem>>, vector<32x64xf32>
    %c0_3 = arith.constant 0 : index
    %c0_4 = arith.constant 0 : index
    %2 = vector.load %arg3[%c0_3, %c0_4] : memref<1x64xf32, #tpu.memory_space<vmem>>, vector<1x64xf32>
    %cst = arith.constant dense<0.000000e+00> : vector<16x64xf32>
    %3 = tpu.matmul %0, %1, %cst {dimension_numbers = #tpu.dot_dimension_numbers<[1], [0], [0], [1], [0, 0, 1, 1], [], []>} : vector<16x32xf32>, vector<32x64xf32>, vector<16x64xf32> -> vector<16x64xf32>
    %4 = vector.broadcast %2 : vector<1x64xf32> to vector<16x64xf32>
    %5 = arith.addf %3, %4 : vector<16x64xf32>
    %cst_5 = arith.constant 0.000000e+00 : f32
    %6 = vector.broadcast %cst_5 : f32 to vector<16x64xf32>
    %7 = arith.maximumf %5, %6 : vector<16x64xf32>
    %c0_6 = arith.constant 0 : index
    %c0_7 = arith.constant 0 : index
    %8 = vector.load %arg4[%c0_6, %c0_7] : memref<64x32xf32, #tpu.memory_space<vmem>>, vector<64x32xf32>
    %c0_8 = arith.constant 0 : index
    %c0_9 = arith.constant 0 : index
    %9 = vector.load %arg5[%c0_8, %c0_9] : memref<1x32xf32, #tpu.memory_space<vmem>>, vector<1x32xf32>
    %cst_10 = arith.constant dense<0.000000e+00> : vector<16x32xf32>
    %10 = tpu.matmul %7, %8, %cst_10 {dimension_numbers = #tpu.dot_dimension_numbers<[1], [0], [0], [1], [0, 0, 1, 1], [], []>} : vector<16x64xf32>, vector<64x32xf32>, vector<16x32xf32> -> vector<16x32xf32>
    %11 = vector.broadcast %9 : vector<1x32xf32> to vector<16x32xf32>
    %12 = arith.addf %10, %11 : vector<16x32xf32>
    %cst_11 = arith.constant 0.000000e+00 : f32
    %13 = vector.broadcast %cst_11 : f32 to vector<16x32xf32>
    %14 = arith.maximumf %12, %13 : vector<16x32xf32>
    %c0_12 = arith.constant 0 : index
    %c0_13 = arith.constant 0 : index
    %15 = vector.load %arg6[%c0_12, %c0_13] : memref<32x16xf32, #tpu.memory_space<vmem>>, vector<32x16xf32>
    %c0_14 = arith.constant 0 : index
    %c0_15 = arith.constant 0 : index
    %16 = vector.load %arg7[%c0_14, %c0_15] : memref<1x16xf32, #tpu.memory_space<vmem>>, vector<1x16xf32>
    %cst_16 = arith.constant dense<0.000000e+00> : vector<16x16xf32>
    %17 = tpu.matmul %14, %15, %cst_16 {dimension_numbers = #tpu.dot_dimension_numbers<[1], [0], [0], [1], [0, 0, 1, 1], [], []>} : vector<16x32xf32>, vector<32x16xf32>, vector<16x16xf32> -> vector<16x16xf32>
    %18 = vector.broadcast %16 : vector<1x16xf32> to vector<16x16xf32>
    %19 = arith.addf %17, %18 : vector<16x16xf32>
    %20 = math.tanh %19 : vector<16x16xf32>
    %c0_17 = arith.constant 0 : index
    %c0_18 = arith.constant 0 : index
    %21 = vector.load %arg8[%c0_17, %c0_18] : memref<16x16xf32, #tpu.memory_space<vmem>>, vector<16x16xf32>
    tpu.vector_store %arg8[%c0_17, %c0_18], %20 {strides = array<i32>} : memref<16x16xf32, #tpu.memory_space<vmem>>, vector<16x16xf32>,
    return
  }
  func.func @transform_0(%arg0: i32) -> (i32, i32) {
    %c0_i32 = arith.constant 0 : i32
    %c0_i32_0 = arith.constant 0 : i32
    return %arg0, %c0_i32 : i32, i32
  }
  func.func @transform_1(%arg0: i32) -> (i32, i32) {
    %c0_i32 = arith.constant 0 : i32
    %c0_i32_0 = arith.constant 0 : i32
    %c0_i32_1 = arith.constant 0 : i32
    return %c0_i32, %c0_i32_0 : i32, i32
  }
  func.func @transform_2(%arg0: i32) -> (i32, i32) {
    %c0_i32 = arith.constant 0 : i32
    %c0_i32_0 = arith.constant 0 : i32
    %c0_i32_1 = arith.constant 0 : i32
    return %c0_i32, %c0_i32_0 : i32, i32
  }
  func.func @transform_3(%arg0: i32) -> (i32, i32) {
    %c0_i32 = arith.constant 0 : i32
    %c0_i32_0 = arith.constant 0 : i32
    %c0_i32_1 = arith.constant 0 : i32
    return %c0_i32, %c0_i32_0 : i32, i32
  }
  func.func @transform_4(%arg0: i32) -> (i32, i32) {
    %c0_i32 = arith.constant 0 : i32
    %c0_i32_0 = arith.constant 0 : i32
    %c0_i32_1 = arith.constant 0 : i32
    return %c0_i32, %c0_i32_0 : i32, i32
  }
  func.func @transform_5(%arg0: i32) -> (i32, i32) {
    %c0_i32 = arith.constant 0 : i32
    %c0_i32_0 = arith.constant 0 : i32
    %c0_i32_1 = arith.constant 0 : i32
    return %c0_i32, %c0_i32_0 : i32, i32
  }
  func.func @transform_6(%arg0: i32) -> (i32, i32) {
    %c0_i32 = arith.constant 0 : i32
    %c0_i32_0 = arith.constant 0 : i32
    %c0_i32_1 = arith.constant 0 : i32
    return %c0_i32, %c0_i32_0 : i32, i32
  }
  func.func @transform_7(%arg0: i32) -> (i32, i32) {
    %c0_i32 = arith.constant 0 : i32
    %c0_i32_0 = arith.constant 0 : i32
    return %arg0, %c0_i32 : i32, i32
  }
}

</mosaic_0001>

<bundles_post_ra>
// kernel: tpu_custom_call.1
= control target key start
LH: loop header
LB: loop body
LE: loop exit
PB: predicated region body
PF: predicated region fallthrough
CT: control target
= control target key end

     0   :  { %vm40_vm0 = vcmask 261120   ;;  %s550_s0 = inlined_call_operand.vmem [shape: f32[16,32], index: 0, kind: input, shape index: {}]   ;;  %s551_s1 = inlined_call_operand.vmem [shape: f32[32,64], index: 1, kind: input, shape index: {}]   ;;  %s552_s2 = inlined_call_operand.vmem [shape: f32[1,64], index: 2, kind: input, shape index: {}]   ;;  %s553_s3 = inlined_call_operand.vmem [shape: f32[64,32], index: 3, kind: input, shape index: {}]   ;;  %s554_s4 = inlined_call_operand.vmem [shape: f32[1,32], index: 4, kind: input, shape index: {}]   ;;  %s555_s5 = inlined_call_operand.vmem [shape: f32[32,16], index: 5, kind: input, shape index: {}]   ;;  %s556_s6 = inlined_call_operand.vmem [shape: f32[1,16], index: 6, kind: input, shape index: {}]   ;;  %s557_s7 = inlined_call_operand.hbm [shape: f32[16,16], index: 7, kind: output, shape index: {}]  }
   0x1   :  { %v32_v0 = vld [vmem:[%s551_s1 + $0x18] sm:$0xff]  ;;  %v31_v1 = vld [vmem:[%s551_s1 + $0x10] sm:$0xff]  ;;  %v27_v2 = vld [vmem:[%s550_s0] sm:$0xff] }
   0x2   :  { %367 = vmatprep.subr.mxu0 %v32_v0  ;;  %v30_v3 = vld [vmem:[%s551_s1 + $0x8] sm:$0xff]  ;;  %375 = vmatprep.mubr.msk.f32.mxu0 %vm40_vm0, %v27_v2  ;;  %v131_v4 = vld [vmem:[%s553_s3 + $0x38] sm:$0xff]  ;;  %v130_v5 = vld [vmem:[%s553_s3 + $0x30] sm:$0xff] }
   0x3   :  { %368 = vmatpush3.msra.mxu0 %v32_v0  ;;  %378 = vmatprep.subr.mxu1 %v131_v4 }
   0x4   :  { %369 = vmatprep.subr.mxu0 %v31_v1 }
   0x5   :  { %12 = vsyncpa [#allocation3], 0  ;;  %370 = vmatpush3.msra.mxu0 %v31_v1  ;;  %v29_v6 = vld [vmem:[%s551_s1] sm:$0xff]  ;;  %379 = vmatpush3.msra.mxu1 %v131_v4  ;;  %v129_v7 = vld [vmem:[%s553_s3 + $0x28] sm:$0xff]  ;;  %vm139_vm1 = vcmask 523264   ;;  %vm317_vm2 = vcmask 130048  }
   0x6   :  { %371 = vmatprep.subr.mxu0 %v30_v3  ;;  %380 = vmatprep.subr.mxu1 %v130_v5  ;;  %v28_v8 = vld [vmem:[%s550_s0 + $0x8] sm:$0xff]  ;;  %v128_v9 = vld [vmem:[%s553_s3 + $0x20] sm:$0xff]  ;;  %v127_v10 = vld [vmem:[%s553_s3 + $0x18] sm:$0xff] }
   0x7   :  { %372 = vmatpush3.msra.mxu0 %v30_v3  ;;  %381 = vmatpush3.msra.mxu1 %v130_v5  ;;  %v126_v11 = vld [vmem:[%s553_s3 + $0x10] sm:$0xff]  ;;  %v125_v12 = vld [vmem:[%s553_s3 + $0x8] sm:$0xff]  ;;  %v124_v13 = vld [vmem:[%s553_s3] sm:$0xff] }
   0x8   :  { %373 = vmatprep.subr.mxu0 %v29_v6  ;;  %382 = vmatprep.subr.mxu1 %v129_v7  ;;  %v336_v14 = vld [vmem:[%s552_s2] ss:$0 sm:$0xff]  ;;  %v226_v21 = vld [vmem:[%s555_s5 + $0x18] sm:$0xff]  ;;  %v225_v22 = vld [vmem:[%s555_s5 + $0x10] sm:$0xff] }
   0x9   :  { %374 = vmatpush3.msra.mxu0 %v29_v6  ;;  %383 = vmatpush3.msra.mxu1 %v129_v7  ;;  %v224_v23 = vld [vmem:[%s555_s5 + $0x8] sm:$0xff]  ;;  %v223_v24 = vld [vmem:[%s555_s5] sm:$0xff] }
   0xa   :  { %376 = vmatmul.mubr.msk.f32.vlgmr.msra.gmra.mxu0 %vm40_vm0, %v28_v8  ;;  %384 = vmatprep.subr.mxu1 %v128_v9  ;;  %v339_v25 = vld [vmem:[%s554_s4] ss:$0 sm:$0xff]  ;;  %s437_s4 = smov [#allocation2]  }
   0xb   :  { %385 = vmatpush3.msra.mxu1 %v128_v9  ;;  %397 = vmatprep.subr.mxu0 %v226_v21  ;;  %v342_v32 = vld [vmem:[%s556_s6] ss:$0 sm:$0xff]  ;;  %s325_s5 = sshll.u32 %s437_s4, 4  ;;  %s326_s5 = int_to_ptr.vmem [resolvable:$true] %s325_s5 }
   0xc   :  { %386 = vmatprep.subr.mxu1 %v127_v10  ;;  %398 = vmatpush3.msra.mxu0 %v226_v21  ;;  %s415_s16 = scalar_lea.vmem %s326_s5, 256  ;;  %p420_p1 = scmp.lt.s32.totalorder %s326_s5, %s326_s5 }
   0xd   :  { %387 = vmatpush3.msra.mxu1 %v127_v10  ;;  %399 = vmatprep.subr.mxu0 %v225_v22  ;;  %p416_p0 = scmp.ne.s32.totalorder %s326_s5, %s415_s16  ;;  %p421_p2 = scmp.lt.s32.totalorder %s415_s16, %s415_s16 }
   0xe   :  { %388 = vmatprep.subr.mxu1 %v126_v11  ;;  %400 = vmatpush3.msra.mxu0 %v225_v22 }
   0xf   :  { %389 = vmatpush3.msra.mxu1 %v126_v11  ;;  %401 = vmatprep.subr.mxu0 %v224_v23  ;;  %p422_p3 = por %p421_p2, %p420_p1 }
  0x10   :  { %390 = vmatprep.subr.mxu1 %v125_v12  ;;  %402 = vmatpush3.msra.mxu0 %v224_v23 }
  0x11   :  { %391 = vmatpush3.msra.mxu1 %v125_v12  ;;  %403 = vmatprep.subr.mxu0 %v223_v24  ;;  %p423_p4 = pnand %p422_p3, %p416_p0 }
  0x12   :  { %392 = vmatprep.subr.mxu1 %v124_v13  ;;  %404 = vmatpush3.msra.mxu0 %v223_v24 }
  0x13   :  { %393 = vmatpush3.msra.mxu1 %v124_v13 }
  0xca   :  { %v377_v15 = vpop.f32.mrf.mxu0 }
  0xcb   :  { %v119_v16 = vadd.f32 %v377_v15, %v336_v14 }
  0xcc   :  { %v113_v17 = vpop.f32.mrf.mxu0 }
  0xcd   :  { %v114_v18 = vadd.f32 %v336_v14, %v113_v17  ;;  %v123_v20 = vmax.f32 %v119_v16, 0.0 }
  0xcf   :  { %v122_v19 = vmax.f32 %v114_v18, 0.0 }
  0xd1   :  { %394 = vmatprep.mubr.msk.f32.mxu1 %vm139_vm1, %v122_v19 }
  0xd2   :  { %395 = vmatmul.mubr.msk.f32.vlgmr.msra.gmra.mxu1 %vm139_vm1, %v123_v20 }
 0x192   :  { %v396_v26 = vpop.f32.mrf.mxu1 }
 0x193   :  { %v218_v27 = vadd.f32 %v396_v26, %v339_v25 }
 0x194   :  { %v212_v28 = vpop.f32.mrf.mxu1 }
 0x195   :  { %v213_v29 = vadd.f32 %v339_v25, %v212_v28  ;;  %v222_v31 = vmax.f32 %v218_v27, 0.0 }
 0x197   :  { %v221_v30 = vmax.f32 %v213_v29, 0.0 }
 0x199   :  { %405 = vmatprep.mubr.msk.f32.mxu0 %vm40_vm0, %v221_v30 }
 0x19a   :  { %406 = vmatmul.mubr.msk.f32.vlgmr.msra.gmra.mxu0 %vm40_vm0, %v222_v31 }
 0x25a   :  { %v407_v33 = vpop.f32.mrf.mxu0 }
 0x25b   :  { %v312_v34 = vadd.f32 %v407_v33, %v342_v32 }
 0x25c   :  { %v306_v35 = vpop.f32.mrf.mxu0 }
 0x25d   :  { %411 = vtanh.f32 %v312_v34  ;;  %v307_v36 = vadd.f32 %v342_v32, %v306_v35 }
 0x25f   :  { %413 = vtanh.f32 %v307_v36 }
 0x26a   :  { %v412_v37 = vpop.eup %411 }
 0x26b   :  { %319 = vst.msk [vmem:[#allocation2 + $0x8] sm:$0xff] %vm317_vm2, %v412_v37 }
 0x26c   :  { %v414_v38 = vpop.eup %413 }
 0x26d   :  { %318 = vst.msk [vmem:[#allocation2] sm:$0xff] %vm317_vm2, %v414_v38 }
 0x26e   :  { %426 = shalt.err (!%p423_p4)
}
 0x26f   :  { %s438_s6 = smov 128   ;;  %s439_s17 = smov 8  }
 0x270   :  { %331 = dma.vmem_to_hbm [thread:$0]  %s326_s5, 256, %s557_s7, [#allocation3], %s438_s6, %s438_s6, %s439_s17  }
 0x271   :  { %435 = dma.done.wait [#allocation3], 256  }
 0x272   :  { %436 = vsyncadd [#allocation3], 4294967040 }
 0x273   :  { %335 = vsyncpa [#allocation3], 1 }

</bundles_post_ra>
